<compile_context>
chip_gen: v7x
topology: tpu7x:2x2x1
jax: 0.10.0
libtpu: 0.0.40
codegen_flags: <defaults>
</compile_context>

<pallas_src>
import jax
import jax.numpy as jnp
from jax.experimental import pallas as pl
from jax.experimental.pallas import tpu as pltpu


def _fused_add_linear_clamp_kernel(x_ref, p_ref, w_ref, b_ref, o_ref):
    # (tile_m, K) elementwise add on the VPU.
    xp = x_ref[...] + p_ref[...]
    w = w_ref[...]                                   # (K, N), resident
    # K is tiny (4): unrolled VPU contraction -- (tile_m,1)*(1,N) mul-adds.
    acc = xp[:, 0:1] * w[0:1, :]
    for k in range(1, xp.shape[1]):                  # static unroll, K=4
        acc = acc + xp[:, k:k + 1] * w[k:k + 1, :]
    acc = acc + b_ref[...]                           # (1, N) bias broadcast
    o_ref[...] = jnp.clip(acc, 0.0, 1.0).astype(o_ref.dtype)


def my_module_forward(x, param, w, b, *, tile_m=4096):
    """x: (M, K) f32, param: (M, K) f32 (elementwise add, torch semantics),
    w: (K, N) f32 (already transposed from torch's (N, K)), b: (N,) f32."""
    M, K = x.shape
    N = w.shape[1]
    b2 = b.reshape(1, N)

    # Row tile: full M when it fits (block dim == array dim is always legal),
    # otherwise a multiple-of-8 tile; Pallas masks the partial last block.
    if M <= tile_m:
        tile_m = M
    grid = (pl.cdiv(M, tile_m),)

    return pl.pallas_call(
        _fused_add_linear_clamp_kernel,
        out_shape=jax.ShapeDtypeStruct((M, N), x.dtype),
        grid_spec=pl.GridSpec(
            grid=grid,
            in_specs=[
                pl.BlockSpec((tile_m, K), lambda i: (i, 0)),   # x tile
                pl.BlockSpec((tile_m, K), lambda i: (i, 0)),   # param tile
                pl.BlockSpec((K, N), lambda i: (0, 0)),        # w resident
                pl.BlockSpec((1, N), lambda i: (0, 0)),        # b resident
            ],
            out_specs=pl.BlockSpec((tile_m, N), lambda i: (i, 0)),
        ),
        compiler_params=pltpu.CompilerParams(
            dimension_semantics=("parallel",),      # shards over v7x's 2 TCs
            vmem_limit_bytes=32 * 1024 * 1024,      # covers v5e's 16 MiB default
        ),
    )(x, param, w, b2)


def reference(x, param, w, b):
    return jnp.clip((x + param) @ w + b, 0.0, 1.0)


if __name__ == "__main__":
    key = jax.random.PRNGKey(0)
    k_x, k_p, k_w, k_b, k_fcw, k_fcb = jax.random.split(key, 6)

    # Shapes implied by the module: param (3,4), Linear(4,5) -> x is (3,4).
    M, K, N = 3, 4, 5
    x = jax.random.normal(k_x, (M, K), dtype=jnp.float32)
    # torch.rand -> uniform [0, 1)
    param = jax.random.uniform(k_p, (M, K), dtype=jnp.float32)
    # nn.Linear(4, 5): weight (5, 4), bias (5,). Store weight transposed (K, N).
    w_torch = jax.random.normal(k_w, (N, K), dtype=jnp.float32) * 0.5
    w = w_torch.T                                                    # (K, N)
    b = jax.random.normal(k_b, (N,), dtype=jnp.float32) * 0.1

    # self.fc = Linear(5, 5) exists in __init__ but is unused in forward;
    # initialized only for parity with the module definition.
    _fc_w = jax.random.normal(k_fcw, (5, 5), dtype=jnp.float32)
    _fc_b = jax.random.normal(k_fcb, (5,), dtype=jnp.float32)

    out = my_module_forward(x, param, w, b)
    out = jax.block_until_ready(out)

    ref = reference(x, param, w, b)
    assert out.shape == (M, N), out.shape
    assert jnp.allclose(out, ref, atol=1e-5, rtol=1e-5), (out, ref)
    print("KERNEL_OK")
</pallas_src>

<mosaic_0001>
module attributes {stable_mosaic.version = 11 : i64} {
  func.func @_fused_add_linear_clamp_kernel(%arg0: i32, %arg1: memref<3x4xf32, #tpu.memory_space<vmem>>, %arg2: memref<3x4xf32, #tpu.memory_space<vmem>>, %arg3: memref<4x5xf32, #tpu.memory_space<vmem>>, %arg4: memref<1x5xf32, #tpu.memory_space<vmem>>, %arg5: memref<3x5xf32, #tpu.memory_space<vmem>>) attributes {dimension_semantics = [#tpu.dimension_semantics<parallel>], iteration_bounds = array<i64: 1>, scalar_prefetch = 0 : i64, scratch_operands = 0 : i64, tpu.core_type = #tpu.core_type<tc>, window_params = [{transform_indices = @transform_0, window_bounds = array<i64: 3, 4>}, {transform_indices = @transform_1, window_bounds = array<i64: 3, 4>}, {pipeline_mode = #tpu.pipeline_mode<synchronous>, transform_indices = @transform_2, window_bounds = array<i64: 4, 5>}, {pipeline_mode = #tpu.pipeline_mode<synchronous>, transform_indices = @transform_3, window_bounds = array<i64: 1, 5>}, {transform_indices = @transform_4, window_bounds = array<i64: 3, 5>}]} {
    %c0 = arith.constant 0 : index
    %c0_0 = arith.constant 0 : index
    %0 = vector.load %arg1[%c0, %c0_0] : memref<3x4xf32, #tpu.memory_space<vmem>>, vector<3x4xf32>
    %c0_1 = arith.constant 0 : index
    %c0_2 = arith.constant 0 : index
    %1 = vector.load %arg2[%c0_1, %c0_2] : memref<3x4xf32, #tpu.memory_space<vmem>>, vector<3x4xf32>
    %2 = arith.addf %0, %1 : vector<3x4xf32>
    %c0_3 = arith.constant 0 : index
    %c0_4 = arith.constant 0 : index
    %3 = vector.load %arg3[%c0_3, %c0_4] : memref<4x5xf32, #tpu.memory_space<vmem>>, vector<4x5xf32>
    %4 = vector.extract_strided_slice %2 {offsets = [0, 0], sizes = [3, 1], strides = [1, 1]} : vector<3x4xf32> to vector<3x1xf32>
    %5 = vector.extract_strided_slice %3 {offsets = [0, 0], sizes = [1, 5], strides = [1, 1]} : vector<4x5xf32> to vector<1x5xf32>
    %6 = vector.broadcast %4 : vector<3x1xf32> to vector<3x5xf32>
    %7 = vector.broadcast %5 : vector<1x5xf32> to vector<3x5xf32>
    %8 = arith.mulf %6, %7 : vector<3x5xf32>
    %9 = vector.extract_strided_slice %2 {offsets = [0, 1], sizes = [3, 1], strides = [1, 1]} : vector<3x4xf32> to vector<3x1xf32>
    %10 = vector.extract_strided_slice %3 {offsets = [1, 0], sizes = [1, 5], strides = [1, 1]} : vector<4x5xf32> to vector<1x5xf32>
    %11 = vector.broadcast %9 : vector<3x1xf32> to vector<3x5xf32>
    %12 = vector.broadcast %10 : vector<1x5xf32> to vector<3x5xf32>
    %13 = arith.mulf %11, %12 : vector<3x5xf32>
    %14 = arith.addf %8, %13 : vector<3x5xf32>
    %15 = vector.extract_strided_slice %2 {offsets = [0, 2], sizes = [3, 1], strides = [1, 1]} : vector<3x4xf32> to vector<3x1xf32>
    %16 = vector.extract_strided_slice %3 {offsets = [2, 0], sizes = [1, 5], strides = [1, 1]} : vector<4x5xf32> to vector<1x5xf32>
    %17 = vector.broadcast %15 : vector<3x1xf32> to vector<3x5xf32>
    %18 = vector.broadcast %16 : vector<1x5xf32> to vector<3x5xf32>
    %19 = arith.mulf %17, %18 : vector<3x5xf32>
    %20 = arith.addf %14, %19 : vector<3x5xf32>
    %21 = vector.extract_strided_slice %2 {offsets = [0, 3], sizes = [3, 1], strides = [1, 1]} : vector<3x4xf32> to vector<3x1xf32>
    %22 = vector.extract_strided_slice %3 {offsets = [3, 0], sizes = [1, 5], strides = [1, 1]} : vector<4x5xf32> to vector<1x5xf32>
    %23 = vector.broadcast %21 : vector<3x1xf32> to vector<3x5xf32>
    %24 = vector.broadcast %22 : vector<1x5xf32> to vector<3x5xf32>
    %25 = arith.mulf %23, %24 : vector<3x5xf32>
    %26 = arith.addf %20, %25 : vector<3x5xf32>
    %c0_5 = arith.constant 0 : index
    %c0_6 = arith.constant 0 : index
    %27 = vector.load %arg4[%c0_5, %c0_6] : memref<1x5xf32, #tpu.memory_space<vmem>>, vector<1x5xf32>
    %28 = vector.broadcast %27 : vector<1x5xf32> to vector<3x5xf32>
    %29 = arith.addf %26, %28 : vector<3x5xf32>
    %cst = arith.constant 0.000000e+00 : f32
    %cst_7 = arith.constant 1.000000e+00 : f32
    %30 = vector.broadcast %cst : f32 to vector<3x5xf32>
    %31 = arith.maximumf %30, %29 : vector<3x5xf32>
    %32 = vector.broadcast %cst_7 : f32 to vector<3x5xf32>
    %33 = arith.minimumf %32, %31 : vector<3x5xf32>
    %c0_8 = arith.constant 0 : index
    %c0_9 = arith.constant 0 : index
    %34 = vector.load %arg5[%c0_8, %c0_9] : memref<3x5xf32, #tpu.memory_space<vmem>>, vector<3x5xf32>
    tpu.vector_store %arg5[%c0_8, %c0_9], %33 {strides = array<i32>} : memref<3x5xf32, #tpu.memory_space<vmem>>, vector<3x5xf32>,
    return
  }
  func.func @transform_0(%arg0: i32) -> (i32, i32) {
    %c0_i32 = arith.constant 0 : i32
    %c0_i32_0 = arith.constant 0 : i32
    return %arg0, %c0_i32 : i32, i32
  }
  func.func @transform_1(%arg0: i32) -> (i32, i32) {
    %c0_i32 = arith.constant 0 : i32
    %c0_i32_0 = arith.constant 0 : i32
    return %arg0, %c0_i32 : i32, i32
  }
  func.func @transform_2(%arg0: i32) -> (i32, i32) {
    %c0_i32 = arith.constant 0 : i32
    %c0_i32_0 = arith.constant 0 : i32
    %c0_i32_1 = arith.constant 0 : i32
    return %c0_i32, %c0_i32_0 : i32, i32
  }
  func.func @transform_3(%arg0: i32) -> (i32, i32) {
    %c0_i32 = arith.constant 0 : i32
    %c0_i32_0 = arith.constant 0 : i32
    %c0_i32_1 = arith.constant 0 : i32
    return %c0_i32, %c0_i32_0 : i32, i32
  }
  func.func @transform_4(%arg0: i32) -> (i32, i32) {
    %c0_i32 = arith.constant 0 : i32
    %c0_i32_0 = arith.constant 0 : i32
    return %arg0, %c0_i32 : i32, i32
  }
}

</mosaic_0001>

<bundles_post_ra>
// kernel: tpu_custom_call.1
= control target key start
LH: loop header
LB: loop body
LE: loop exit
PB: predicated region body
PF: predicated region fallthrough
CT: control target
= control target key end

     0   :  { %9 = vsyncpa [#allocation3], 0  ;;  %s273_s0 = inlined_call_operand.hbm [shape: f32[3,4], index: 0, kind: input, shape index: {}]   ;;  %s274_s1 = inlined_call_operand.hbm [shape: f32[3,4], index: 1, kind: input, shape index: {}]   ;;  %s275_s2 = inlined_call_operand.vmem [shape: f32[4,5], index: 2, kind: input, shape index: {}]   ;;  %s276_s3 = inlined_call_operand.vmem [shape: f32[1,5], index: 3, kind: input, shape index: {}]   ;;  %s277_s4 = inlined_call_operand.hbm [shape: f32[3,5], index: 4, kind: output, shape index: {}]  }
   0x1   :  { %10 = vsyncpa [#allocation6], 0 }
   0x2   :  { %11 = vsyncpa [#allocation4], 0  ;;  %s199_s15 = smov [#allocation2]   ;;  %s200_s17 = smov [#allocation5]  }
   0x3   :  { %s18_s16 = sshll.u32 %s199_s15, 4  ;;  %s28_s18 = sshll.u32 %s200_s17, 4  ;;  %s19_s16 = int_to_ptr.vmem [resolvable:$true] %s18_s16  ;;  %s29_s18 = int_to_ptr.vmem [resolvable:$true] %s28_s18 }
   0x4   :  { %s127_s21 = scalar_lea.hbm %s273_s0, 64 }
   0x5   :  { %p128_p0 = scmp.ne.s32.totalorder %s273_s0, %s127_s21  ;;  %p131_p1 = scmp.lt.u32.totalorder %s127_s21, %s273_s0 }
   0x7   :  { %p133_p2 = pnand %p131_p1, %p128_p0 }
   0x9   :  { %136 = shalt.err (!%p133_p2)
}
   0xa   :  { %s137_s26 = scalar_lea.vmem %s19_s16, 64  ;;  %p142_p4 = scmp.lt.s32.totalorder %s19_s16, %s19_s16 }
   0xb   :  { %p138_p3 = scmp.ne.s32.totalorder %s19_s16, %s137_s26  ;;  %p143_p5 = scmp.lt.s32.totalorder %s137_s26, %s137_s26 }
   0xd   :  { %p144_p6 = por %p143_p5, %p142_p4 }
   0xf   :  { %p145_p7 = pnand %p144_p6, %p138_p3 }
  0x11   :  { %148 = shalt.err (!%p145_p7)
}
  0x12   :  { %21 = dma.hbm_to_vmem [thread:$0]  %s273_s0, 64, %s19_s16, [#allocation3]  }
  0x13   :  { %s149_s5 = scalar_lea.hbm %s274_s1, 64 }
  0x14   :  { %p150_p8 = scmp.ne.s32.totalorder %s274_s1, %s149_s5  ;;  %p153_p9 = scmp.lt.u32.totalorder %s149_s5, %s274_s1 }
  0x16   :  { %p155_p10 = pnand %p153_p9, %p150_p8 }
  0x18   :  { %158 = shalt.err (!%p155_p10)
}
  0x19   :  { %s159_s10 = scalar_lea.vmem %s29_s18, 64  ;;  %p164_p12 = scmp.lt.s32.totalorder %s29_s18, %s29_s18 }
  0x1a   :  { %p160_p11 = scmp.ne.s32.totalorder %s29_s18, %s159_s10  ;;  %p165_p13 = scmp.lt.s32.totalorder %s159_s10, %s159_s10 }
  0x1c   :  { %p166_p0 = por %p165_p13, %p164_p12 }
  0x1e   :  { %p167_p1 = pnand %p166_p0, %p160_p11 }
  0x20   :  { %170 = shalt.err (!%p167_p1)
}
  0x21   :  { %31 = dma.hbm_to_vmem [thread:$0]  %s274_s1, 64, %s29_s18, [#allocation6]  }
  0x22   :  { %193 = dma.done.wait [#allocation3], 64  }
  0x23   :  { %194 = vsyncadd [#allocation3], 4294967232 }
  0x24   :  { %195 = dma.done.wait [#allocation6], 64  }
  0x25   :  { %196 = vsyncadd [#allocation6], 4294967232  ;;  %v201_v0 = vmov 0   ;;  %v202_v1 = vmov 2   ;;  %v42_v2 = vld [vmem:[#allocation2] sm:$0x7]  ;;  %v51_v7 = vlaneseq }
  0x26   :  { %122 = vset.pattern.permute.xlu0 %v201_v0  ;;  %124 = vset.pattern.permute.xlu1 %v202_v1  ;;  %v43_v3 = vld [vmem:[#allocation5] sm:$0x7]  ;;  %v203_v5 = vmov 1   ;;  %v204_v6 = vmov 3   ;;  %v45_v11 = vld [vmem:[%s275_s2] sm:$0xf] }
  0x27   :  { %v44_v4 = vadd.f32 %v43_v3, %v42_v2  ;;  %v52_v8 = vshrl.u32 %v51_v7, 7  ;;  %v114_v28 = vld [vmem:[%s276_s3] ss:$0 sm:$0xff]  ;;  %s205_s2 = smov [#allocation7]   ;;  %vm96_vm0 = vcmask 34816  }
  0x28   :  { %s104_s15 = sshll.u32 %s205_s2, 4  ;;  %s105_s15 = int_to_ptr.vmem [resolvable:$true] %s104_s15 }
  0x29   :  { %48 = vperm.xlu0 %122, %v44_v4   ;;  %67 = vperm.xlu1 %124, %v44_v4   ;;  %v53_v9 = vsub.s32 0, %v52_v8  ;;  %v62_v10 = vsub.s32 1, %v52_v8  ;;  %v72_v13 = vsub.s32 2, %v52_v8  ;;  %v82_v15 = vsub.s32 3, %v52_v8  ;;  %s171_s16 = scalar_lea.vmem %s105_s15, 64  ;;  %p176_p3 = scmp.lt.s32.totalorder %s105_s15, %s105_s15 }
  0x2a   :  { %p172_p2 = scmp.ne.s32.totalorder %s105_s15, %s171_s16  ;;  %p177_p4 = scmp.lt.s32.totalorder %s171_s16, %s171_s16 }
  0x2b   :  { %v54_v16 = vrot.slane %v45_v11, %v53_v9  ;;  %v63_v17 = vrot.slane %v45_v11, %v62_v10  ;;  %v73_v18 = vrot.slane %v45_v11, %v72_v13  ;;  %v83_v19 = vrot.slane %v45_v11, %v82_v15 }
  0x2c   :  { %p178_p5 = por %p177_p4, %p176_p3 }
  0x2d   :  { %123 = vset.pattern.permute.xlu0 %v203_v5  ;;  %125 = vset.pattern.permute.xlu1 %v204_v6 }
  0x2e   :  { %57 = vperm.xlu0 %123, %v44_v4   ;;  %77 = vperm.xlu1 %125, %v44_v4   ;;  %p179_p6 = pnand %p178_p5, %p172_p2 }
  0x32   :  { %126 = vset.pattern.permute.xlu0 %v204_v6 }
  0xa8   :  { %v49_v12 = vpop.permute.xlu0 %48  ;;  %v68_v14 = vpop.permute.xlu1 %67 }
  0xa9   :  { %v55_v22 = vmul.f32 %v54_v16, %v49_v12  ;;  %v74_v24 = vmul.f32 %v73_v18, %v68_v14 }
  0xad   :  { %v58_v20 = vpop.permute.xlu0 %57  ;;  %v78_v21 = vpop.permute.xlu1 %77 }
  0xae   :  { %v64_v23 = vmul.f32 %v63_v17, %v58_v20  ;;  %v84_v26 = vmul.f32 %v83_v19, %v78_v21 }
  0xb0   :  { %v65_v25 = vadd.f32 %v64_v23, %v55_v22 }
  0xb2   :  { %v75_v27 = vadd.f32 %v74_v24, %v65_v25 }
  0xb4   :  { %v85_v29 = vadd.f32 %v84_v26, %v75_v27 }
  0xb6   :  { %v93_v30 = vadd.f32 %v114_v28, %v85_v29 }
  0xb8   :  { %v94_v31 = vmax.f32 %v93_v30, 0.0 }
  0xba   :  { %v95_v32 = vmin.f32 %v94_v31, 1.0 }
  0xbc   :  { %97 = vst.msk [vmem:[#allocation7] sm:$0x7] %vm96_vm0, %v95_v32 }
  0xbd   :  { %182 = shalt.err (!%p179_p6)
}
  0xbe   :  { %s183_s3 = scalar_lea.hbm %s277_s4, 64 }
  0xbf   :  { %p184_p7 = scmp.ne.s32.totalorder %s277_s4, %s183_s3  ;;  %p187_p8 = scmp.lt.u32.totalorder %s183_s3, %s277_s4 }
  0xc1   :  { %p189_p9 = pnand %p187_p8, %p184_p7 }
  0xc3   :  { %192 = shalt.err (!%p189_p9)
}
  0xc4   :  { %107 = dma.vmem_to_hbm [thread:$0]  %s105_s15, 64, %s277_s4, [#allocation4]  }
  0xc5   :  { %197 = dma.done.wait [#allocation4], 64  }
  0xc6   :  { %198 = vsyncadd [#allocation4], 4294967232 }
  0xc7   :  { %111 = vsyncpa [#allocation3], 1 }
  0xc8   :  { %112 = vsyncpa [#allocation6], 1 }
  0xc9   :  { %113 = vsyncpa [#allocation4], 1 }

</bundles_post_ra>
